<compile_context>
chip_gen: v6e
topology: v6e:2x2x1
jax: 0.10.0
libtpu: 0.0.40
codegen_flags: <defaults>
</compile_context>

<pallas_src>
import jax
import jax.numpy as jnp
from jax.experimental import pallas as pl
from jax.experimental.pallas import tpu as pltpu


def _matmul_kernel_f32out(x1_ref, x2_ref, o_ref):
    """f32-output path: accumulate directly into the VMEM-resident output tile."""
    @pl.when(pl.program_id(2) == 0)
    def _():
        o_ref[...] = jnp.zeros_like(o_ref)

    o_ref[...] += jnp.dot(
        x1_ref[...], x2_ref[...], preferred_element_type=jnp.float32
    )


def _matmul_kernel_scratch(x1_ref, x2_ref, o_ref, acc_ref):
    """General path: f32 scratch accumulator, cast once on the last K step."""
    @pl.when(pl.program_id(2) == 0)
    def _():
        acc_ref[...] = jnp.zeros_like(acc_ref)

    acc_ref[...] += jnp.dot(
        x1_ref[...], x2_ref[...], preferred_element_type=jnp.float32
    )

    @pl.when(pl.program_id(2) == pl.num_programs(2) - 1)
    def _():
        o_ref[...] = acc_ref[...].astype(o_ref.dtype)


def _round_up(x, m):
    return ((x + m - 1) // m) * m


def model_forward(x1, x2, *, tm=1024, tn=1024, tk=512):
    """v1 = matmul(x1.permute(0, 1), x2.permute(0, 1)) == x1 @ x2 for 2-D inputs."""
    M, K = x1.shape
    K2, N = x2.shape
    assert K == K2, "inner dimensions must match"
    out_dtype = jnp.result_type(x1.dtype, x2.dtype)
    out_itemsize = jnp.dtype(out_dtype).itemsize

    # Sublane packing granularity (bf16 packs 16 rows/vreg, f32 packs 8).
    m_align = 16 if x1.dtype == jnp.bfloat16 else 8

    # --- Tile selection ------------------------------------------------------
    # A dim that fits in a single tile uses the full dim (legal as a
    # full-array block even when unaligned -> no wrapper-side padding).
    if M <= tm:
        tm = M
    else:
        tm = _round_up(tm, m_align)
    if N <= tn:
        tn = N
    else:
        tn = _round_up(tn, 128)
    if K <= tk:
        tk = K
    else:
        tk = _round_up(tk, 128)

    # v7x megacore: make sure at least one parallel axis has >= 2 blocks when
    # the problem is big enough to be worth splitting across TensorCores.
    if (
        pl.cdiv(M, tm) == 1
        and pl.cdiv(N, tn) == 1
        and N >= 256
        and (M * N * K) >= (1 << 22)
    ):
        tn = _round_up(pl.cdiv(N, 2), 128)

    # --- Padding (K only) ----------------------------------------------------
    # M / N remainders are handled by Pallas partial edge blocks (out-of-bounds
    # output rows/cols are never written back), so they need no padding.  The
    # contraction dim K must be zero-padded when it is split into tiles.
    Kp = K if K <= tk else _round_up(K, tk)
    if Kp != K:
        x1 = jnp.pad(x1, ((0, 0), (0, Kp - K)))
        x2 = jnp.pad(x2, ((0, Kp - K), (0, 0)))

    m_blocks = pl.cdiv(M, tm)
    n_blocks = pl.cdiv(N, tn)
    k_blocks = Kp // tk
    grid = (m_blocks, n_blocks, k_blocks)

    # --- Kernel / scratch selection -------------------------------------------
    if out_dtype == jnp.float32:
        kernel = _matmul_kernel_f32out
        scratch_shapes = []
        acc_bytes = 0
    else:
        kernel = _matmul_kernel_scratch
        scratch_shapes = [pltpu.VMEM((tm, tn), jnp.float32)]
        acc_bytes = tm * tn * 4

    # --- Explicit VMEM budget --------------------------------------------------
    # Needed so the larger tiles also fit under v5e's 16 MiB default scoped
    # limit; capped at 48 MiB so we never exceed v7x's 64 MiB physical VMEM.
    vmem_bytes = (
        2 * tm * tk * x1.dtype.itemsize      # x1 tile, double-buffered
        + 2 * tk * tn * x2.dtype.itemsize    # x2 tile, double-buffered
        + 2 * tm * tn * out_itemsize         # out tile, double-buffered
        + acc_bytes
        + (4 << 20)                          # headroom for internal scratch
    )
    vmem_limit = min(max(vmem_bytes, 32 << 20), 48 << 20)

    # Refetch-aware traffic estimate for XLA's scheduler.
    cost = pl.CostEstimate(
        flops=2 * M * N * Kp,
        transcendentals=0,
        bytes_accessed=(
            x1.dtype.itemsize * M * Kp * n_blocks
            + x2.dtype.itemsize * Kp * N * m_blocks
            + out_itemsize * M * N
        ),
    )

    out = pl.pallas_call(
        kernel,
        out_shape=jax.ShapeDtypeStruct((M, N), out_dtype),
        grid_spec=pltpu.PrefetchScalarGridSpec(
            num_scalar_prefetch=0,
            grid=grid,
            in_specs=[
                pl.BlockSpec((tm, tk), lambda i, j, k: (i, k)),
                pl.BlockSpec((tk, tn), lambda i, j, k: (k, j)),
            ],
            out_specs=pl.BlockSpec((tm, tn), lambda i, j, k: (i, j)),
            scratch_shapes=scratch_shapes,
        ),
        compiler_params=pltpu.CompilerParams(
            dimension_semantics=("parallel", "parallel", "arbitrary"),
            vmem_limit_bytes=vmem_limit,
        ),
        cost_estimate=cost,
    )(x1, x2)
    return out


if __name__ == "__main__":
    key = jax.random.PRNGKey(0)
    k1, k2, k3, k4, k5, k6 = jax.random.split(key, 6)

    # Case 1: tiny shapes in the spirit of the original module (x1 is (1, 2);
    # the module's literal (1,2)@(1,2) is not a valid matmul, so x2 gets a
    # compatible shape).  Exercises the full-array sub-tile block path.
    x1 = jax.random.normal(k1, (1, 2), dtype=jnp.float32)
    x2 = jax.random.normal(k2, (2, 3), dtype=jnp.float32)
    out = model_forward(x1, x2)
    jax.block_until_ready(out)
    ref = jnp.matmul(x1, x2)
    assert out.shape == ref.shape
    assert jnp.allclose(out, ref, atol=1e-5, rtol=1e-5), "mismatch vs reference (tiny)"

    # Case 2: larger shapes -> single M tile, megacore N split, partial N edge
    # block handled without any wrapper-side padding.
    y1 = jax.random.normal(k3, (256, 256), dtype=jnp.float32)
    y2 = jax.random.normal(k4, (256, 384), dtype=jnp.float32)
    out2 = model_forward(y1, y2)
    jax.block_until_ready(out2)
    ref2 = jnp.matmul(y1, y2)
    assert out2.shape == ref2.shape
    assert jnp.allclose(out2, ref2, atol=1e-3, rtol=1e-3), "mismatch vs reference (aligned)"

    # Case 3: unaligned shapes with small explicit tiles -> exercises partial
    # M/N edge blocks plus the zero-padded multi-step K reduction.
    z1 = jax.random.normal(k5, (100, 300), dtype=jnp.float32)
    z2 = jax.random.normal(k6, (300, 200), dtype=jnp.float32)
    out3 = model_forward(z1, z2, tm=64, tn=128, tk=128)
    jax.block_until_ready(out3)
    ref3 = jnp.matmul(z1, z2)
    assert out3.shape == ref3.shape
    assert jnp.allclose(out3, ref3, atol=1e-3, rtol=1e-3), "mismatch vs reference (unaligned)"

    print("KERNEL_OK")
</pallas_src>

<mosaic_0001>
module attributes {stable_mosaic.version = 11 : i64} {
  func.func @_matmul_kernel_f32out(%arg0: i32, %arg1: i32, %arg2: i32, %arg3: memref<1x2xf32, #tpu.memory_space<vmem>>, %arg4: memref<2x3xf32, #tpu.memory_space<vmem>>, %arg5: memref<1x3xf32, #tpu.memory_space<vmem>>) attributes {dimension_semantics = [#tpu.dimension_semantics<parallel>, #tpu.dimension_semantics<parallel>, #tpu.dimension_semantics<arbitrary>], iteration_bounds = array<i64: 1, 1, 1>, scalar_prefetch = 0 : i64, scratch_operands = 0 : i64, tpu.core_type = #tpu.core_type<tc>, window_params = [{transform_indices = @transform_0, window_bounds = array<i64: 1, 2>}, {transform_indices = @transform_1, window_bounds = array<i64: 2, 3>}, {transform_indices = @transform_2, window_bounds = array<i64: 1, 3>}]} {
    %c0_i32 = arith.constant 0 : i32
    %0 = arith.cmpi eq, %arg2, %c0_i32 : i32
    %1 = arith.extui %0 : i1 to i32
    %c0_i32_0 = arith.constant 0 : i32
    %2 = arith.cmpi ne, %1, %c0_i32_0 : i32
    scf.if %2 {
      %cst_8 = arith.constant 0.000000e+00 : f32
      %9 = vector.broadcast %cst_8 : f32 to vector<1x3xf32>
      %c0_9 = arith.constant 0 : index
      %c0_10 = arith.constant 0 : index
      %10 = vector.load %arg5[%c0_9, %c0_10] : memref<1x3xf32, #tpu.memory_space<vmem>>, vector<1x3xf32>
      tpu.vector_store %arg5[%c0_9, %c0_10], %9 {strides = array<i32>} : memref<1x3xf32, #tpu.memory_space<vmem>>, vector<1x3xf32>,
    } else {
    }
    %c0 = arith.constant 0 : index
    %c0_1 = arith.constant 0 : index
    %3 = vector.load %arg5[%c0, %c0_1] : memref<1x3xf32, #tpu.memory_space<vmem>>, vector<1x3xf32>
    %c0_2 = arith.constant 0 : index
    %c0_3 = arith.constant 0 : index
    %4 = vector.load %arg3[%c0_2, %c0_3] : memref<1x2xf32, #tpu.memory_space<vmem>>, vector<1x2xf32>
    %c0_4 = arith.constant 0 : index
    %c0_5 = arith.constant 0 : index
    %5 = vector.load %arg4[%c0_4, %c0_5] : memref<2x3xf32, #tpu.memory_space<vmem>>, vector<2x3xf32>
    %cst = arith.constant dense<0.000000e+00> : vector<1x3xf32>
    %6 = tpu.matmul %4, %5, %cst {dimension_numbers = #tpu.dot_dimension_numbers<[1], [0], [0], [1], [0, 0, 1, 1], [], []>} : vector<1x2xf32>, vector<2x3xf32>, vector<1x3xf32> -> vector<1x3xf32>
    %7 = arith.addf %3, %6 : vector<1x3xf32>
    %c0_6 = arith.constant 0 : index
    %c0_7 = arith.constant 0 : index
    %8 = vector.load %arg5[%c0_6, %c0_7] : memref<1x3xf32, #tpu.memory_space<vmem>>, vector<1x3xf32>
    tpu.vector_store %arg5[%c0_6, %c0_7], %7 {strides = array<i32>} : memref<1x3xf32, #tpu.memory_space<vmem>>, vector<1x3xf32>,
    return
  }
  func.func @transform_0(%arg0: i32, %arg1: i32, %arg2: i32) -> (i32, i32) {
    %c0_i32 = arith.constant 0 : i32
    return %arg0, %arg2 : i32, i32
  }
  func.func @transform_1(%arg0: i32, %arg1: i32, %arg2: i32) -> (i32, i32) {
    %c0_i32 = arith.constant 0 : i32
    return %arg2, %arg1 : i32, i32
  }
  func.func @transform_2(%arg0: i32, %arg1: i32, %arg2: i32) -> (i32, i32) {
    %c0_i32 = arith.constant 0 : i32
    return %arg0, %arg1 : i32, i32
  }
}

</mosaic_0001>

<bundles_post_ra>
// kernel: tpu_custom_call.1
= control target key start
LH: loop header
LB: loop body
LE: loop exit
PB: predicated region body
PF: predicated region fallthrough
CT: control target
= control target key end

     0   :  { %7 = vsyncpa [#allocation3], 0  ;;  %s253_s0 = inlined_call_operand.hbm [shape: f32[1,2], index: 0, kind: input, shape index: {}]   ;;  %s254_s1 = inlined_call_operand.hbm [shape: f32[2,3], index: 1, kind: input, shape index: {}]   ;;  %s255_s2 = inlined_call_operand.hbm [shape: f32[1,3], index: 2, kind: output, shape index: {}]  }
   0x1   :  { %8 = vsyncpa [#allocation6], 0 }
   0x2   :  { %9 = vsyncpa [#allocation4], 0  ;;  %s222_s9 = smov [#allocation2]   ;;  %s223_s11 = smov [#allocation5]  }
   0x3   :  { %s16_s10 = sshll.u32 %s222_s9, 4  ;;  %s26_s12 = sshll.u32 %s223_s11, 4  ;;  %s17_s10 = int_to_ptr.vmem [resolvable:$true] %s16_s10  ;;  %s27_s12 = int_to_ptr.vmem [resolvable:$true] %s26_s12 }
   0x4   :  { %s164_s13 = scalar_lea.vmem %s17_s10, 16  ;;  %s168_s14 = scalar_lea.vmem %s17_s10, 32 }
   0x5   :  { %p165_p0 = scmp.ne.s32.totalorder %s17_s10, %s164_s13  ;;  %p169_p1 = scmp.lt.s32.totalorder %s17_s10, %s17_s10 }
   0x6   :  { %p170_p2 = scmp.lt.s32.totalorder %s168_s14, %s164_s13 }
   0x8   :  { %p171_p3 = por %p170_p2, %p169_p1 }
   0xa   :  { %p172_p4 = pnand %p171_p3, %p165_p0 }
   0xc   :  { %175 = shalt.err (!%p172_p4)
}
   0xd   :  { %19 = dma.hbm_to_vmem [thread:$0]  %s253_s0, 16, %s17_s10, [#allocation3]  }
   0xe   :  { %s184_s17 = scalar_lea.vmem %s27_s12, 32  ;;  %p189_p6 = scmp.lt.s32.totalorder %s27_s12, %s27_s12 }
   0xf   :  { %p185_p5 = scmp.ne.s32.totalorder %s27_s12, %s184_s17  ;;  %p190_p7 = scmp.lt.s32.totalorder %s184_s17, %s184_s17 }
  0x11   :  { %p191_p8 = por %p190_p7, %p189_p6 }
  0x13   :  { %p192_p9 = pnand %p191_p8, %p185_p5 }
  0x15   :  { %195 = shalt.err (!%p192_p9)
}
  0x16   :  { %29 = dma.hbm_to_vmem [thread:$0]  %s254_s1, 32, %s27_s12, [#allocation6]  }
  0x17   :  { %216 = dma.done.wait [#allocation3], 16  }
  0x18   :  { %217 = vsyncadd [#allocation3], 4294967280 }
  0x19   :  { %218 = dma.done.wait [#allocation6], 32  }
  0x1a   :  { %219 = vsyncadd [#allocation6], 4294967264  ;;  %vm40_vm0 = vcmask 16384   ;;  %v224_v0 = vmov 0.0   ;;  %vm225_vm1 = vmmov 0   ;;  %vm49_vm2 = vcmask 1041408  }
  0x1b   :  { %41 = vst.msk [vmem:[#allocation7] sm:$0x1] %vm40_vm0, %v224_v0  ;;  %146 = vmatprep.subr.mxu0 %v224_v0  ;;  %148 = vmatprep.mubr.msk.f32.mxu0 %vm225_vm1, %v224_v0  ;;  %vm45_vm3 = vcmask 15360   ;;  %v44_v1 = vld [vmem:[#allocation5] sm:$0x3]  ;;  %s226_s0 = smov [#allocation7]  }
  0x1c   :  { %v43_v2 = vld [vmem:[#allocation2] sm:$0x1]  ;;  %147 = vmatpush3.msk.msra.mxu0 %vm49_vm2, %v44_v1  ;;  %s132_s1 = sshll.u32 %s226_s0, 4  ;;  %s133_s1 = int_to_ptr.vmem [resolvable:$true] %s132_s1 }
  0x1d   :  { %149 = vmatmul.mubr.msk.f32.vlgmr.msra.gmra.mxu0 %vm45_vm3, %v43_v2  ;;  %s196_s20 = scalar_lea.vmem %s133_s1, 16  ;;  %s200_s21 = scalar_lea.vmem %s133_s1, 32 }
  0x1e   :  { %p197_p10 = scmp.ne.s32.totalorder %s133_s1, %s196_s20  ;;  %p201_p11 = scmp.lt.s32.totalorder %s133_s1, %s133_s1 }
  0x1f   :  { %p202_p12 = scmp.lt.s32.totalorder %s200_s21, %s196_s20 }
  0x21   :  { %p203_p13 = por %p202_p12, %p201_p11 }
  0x22   :  { %v42_v3 = vld [vmem:[#allocation7] sm:$0x1] }
  0x23   :  { %p204_p0 = pnand %p203_p13, %p197_p10 }
  0xdd   :  { %v119_v4 = vpop.f32.mrf.mxu0 }
  0xde   :  { %v123_v5 = vadd.f32 %v119_v4, %v42_v3 }
  0xdf   :  { %v150_v6 = vpop.f32.mrf.mxu0 }
  0xe0   :  { %125 = vst.msk [vmem:[#allocation7] sm:$0x1] %vm40_vm0, %v123_v5 }
  0xe1   :  { %207 = shalt.err (!%p204_p0)
}
  0xe2   :  { %135 = dma.vmem_to_hbm [thread:$0]  %s133_s1, 16, %s255_s2, [#allocation4]  }
  0xe3   :  { %220 = dma.done.wait [#allocation4], 16  }
  0xe4   :  { %221 = vsyncadd [#allocation4], 4294967280 }
  0xe5   :  { %139 = vsyncpa [#allocation3], 1 }
  0xe6   :  { %140 = vsyncpa [#allocation6], 1 }
  0xe7   :  { %141 = vsyncpa [#allocation4], 1 }

</bundles_post_ra>
